<compile_context>
chip_gen: v7x
topology: tpu7x:2x2x1
jax: 0.10.0
libtpu: 0.0.40
codegen_flags: <defaults>
</compile_context>

<pallas_src>
import functools

import jax
import jax.numpy as jnp
from jax.experimental import pallas as pl
from jax.experimental.pallas import tpu as pltpu

n_embed = 64
block_size = 32   # causal-mask size upper bound (T <= block_size)
LANE = 128        # TPU lane width; each of K/Q/V gets one full lane group


def _attn_head_kernel(x_ref, w_ref, b_ref, o_ref, *, seq_len, block_batch,
                      mxu_dtype):
    # x_ref: (bb, T, C)      block of bb sequences, T tokens each
    # w_ref: (C, 3*LANE)     fused K|Q|V weights; Q columns pre-scaled by C**-0.5;
    #                        each head zero-padded to its own 128-lane group
    # b_ref: (1, 3*LANE)     fused bias, padded the same way
    # o_ref: (bb, T, LANE)   lane-dense output; only the first H lanes are real
    bb, T = block_batch, seq_len
    C = x_ref.shape[-1]

    # Fused QKV projection as ONE (bb*T, C) @ (C, 3*LANE) MXU matmul.
    x = x_ref[...].reshape(bb * T, C)
    kqv = jnp.dot(x, w_ref[...], preferred_element_type=jnp.float32) + b_ref[...]
    kqv = kqv.reshape(bb, T, 3 * LANE)

    # 128-lane-aligned slices -> free; padded head columns are exactly zero.
    k = kqv[:, :, 0 * LANE:1 * LANE]            # (bb, T, LANE)
    q = kqv[:, :, 1 * LANE:2 * LANE]            # (bb, T, LANE), already * C**-0.5
    v = kqv[:, :, 2 * LANE:3 * LANE]            # (bb, T, LANE)

    # Per-sequence logits: wei[b, t, s] = k_t . q_s (zero-padded head dims add 0).
    wei = jnp.einsum("bth,bsh->bts", k.astype(mxu_dtype), q.astype(mxu_dtype),
                     preferred_element_type=jnp.float32)          # (bb, T, T)

    # Numerically stable softplus: log(exp(x)+1) = max(x,0) + log(1+exp(-|x|)).
    sp = jnp.maximum(wei, 0.0) + jnp.log(1.0 + jnp.exp(-jnp.abs(wei)))

    # Causal mask (keep t >= s), applied AFTER softplus: masked -> 0, exactly
    # equivalent to masking with -inf before softplus in the reference.
    t_idx = jax.lax.broadcasted_iota(jnp.int32, (bb, T, T), 1)
    s_idx = jax.lax.broadcasted_iota(jnp.int32, (bb, T, T), 2)
    sp = jnp.where(t_idx >= s_idx, sp, 0.0)

    # dropout(p=0.0) is the identity -> skipped.
    # out[b, t, :] = sum_{s<=t} softplus(k_t . q_s) * v_s  -> lane-dense store.
    out = jnp.einsum("bts,bsh->bth", sp.astype(mxu_dtype), v.astype(mxu_dtype),
                     preferred_element_type=jnp.float32)
    o_ref[...] = out.astype(o_ref.dtype)


def self_attention_head(x, wk, bk, wq, bq, wv, bv, *,
                        block_batch=None, compute_dtype=jnp.float32):
    """x: (B, T, C) f32; w*: (C, H) f32 (already transposed vs nn.Linear); b*: (H,)."""
    B, T, C = x.shape
    H = wk.shape[1]
    assert C == n_embed and T <= block_size and H <= LANE

    scale = C ** (-0.5)

    # Fuse K | Q | V, fold the attention scale into Q's columns/bias (free), and
    # pad each head to its own 128-lane group. Zero padding drops out of the
    # head-dim contraction, so results are exact.
    def pad_w(w):
        return jnp.pad(w, ((0, 0), (0, LANE - H)))

    def pad_b(b):
        return jnp.pad(b, (0, LANE - H))

    w_fused = jnp.concatenate([pad_w(wk), pad_w(wq * scale), pad_w(wv)], axis=1)
    b_fused = jnp.concatenate([pad_b(bk), pad_b(bq * scale), pad_b(bv)])
    b_fused = b_fused.reshape(1, 3 * LANE).astype(jnp.float32)

    # Pad T to a sublane multiple so in-kernel (bb, T, .) <-> (bb*T, .) reshapes
    # are free. Padded tokens sit at the end; the causal mask (t >= s) keeps them
    # out of every real row and the wrapper slices them away.
    T_pad = ((T + 7) // 8) * 8
    if T_pad != T:
        x = jnp.pad(x, ((0, 0), (0, T_pad - T), (0, 0)))

    # Sequences per grid step: ONE step by default (v5e/v6e are single-TC; grid
    # steps are a serial loop there). Split only when a block would exceed a
    # ~1024-token VMEM budget — which also gives v7x's two TensorCores blocks
    # that are large enough to be worth sharding.
    if block_batch is None:
        bb_cap = max(1, 1024 // T_pad)
        nb = pl.cdiv(B, min(B, bb_cap))
        bb = pl.cdiv(B, nb)               # balance blocks -> minimal batch padding
    else:
        bb = block_batch
        nb = pl.cdiv(B, bb)
    B_pad = nb * bb
    if B_pad != B:
        x = jnp.pad(x, ((0, B_pad - B), (0, 0), (0, 0)))

    if compute_dtype != jnp.float32:      # opt-in bf16 MXU operands (v6e / v7x)
        x = x.astype(compute_dtype)
        w_fused = w_fused.astype(compute_dtype)

    kernel = functools.partial(_attn_head_kernel, seq_len=T_pad,
                               block_batch=bb, mxu_dtype=compute_dtype)

    out = pl.pallas_call(
        kernel,
        out_shape=jax.ShapeDtypeStruct((B_pad, T_pad, LANE), jnp.float32),
        grid_spec=pltpu.PrefetchScalarGridSpec(
            num_scalar_prefetch=0,
            grid=(nb,),
            in_specs=[
                pl.BlockSpec((bb, T_pad, C), lambda g: (g, 0, 0)),
                pl.BlockSpec((C, 3 * LANE), lambda g: (0, 0)),
                pl.BlockSpec((1, 3 * LANE), lambda g: (0, 0)),
            ],
            out_specs=pl.BlockSpec((bb, T_pad, LANE), lambda g: (g, 0, 0)),
        ),
        compiler_params=pltpu.CompilerParams(
            dimension_semantics=("parallel",)),
    )(x, w_fused, b_fused)

    # (B_pad, T_pad, LANE) -> (B, T, H): cheap slice, no transpose round trip.
    return out[:B, :T, :H]


def _reference(x, wk, bk, wq, bq, wv, bv):
    B, T, C = x.shape
    k = x @ wk + bk
    q = x @ wq + bq
    v = x @ wv + bv
    wei = jnp.einsum("bth,bsh->bts", k, q) * C ** (-0.5)
    tril = jnp.tril(jnp.ones((T, T)))
    wei = jnp.where(tril == 0, -jnp.inf, wei)
    wei = jnp.log(jnp.exp(wei) + 1.0)
    return wei @ v


if __name__ == "__main__":
    head_size = 16
    B, T, C = 2, 8, n_embed

    key = jax.random.PRNGKey(0)
    kx, kwk, kbk, kwq, kbq, kwv, kbv = jax.random.split(key, 7)

    x = jax.random.normal(kx, (B, T, C), dtype=jnp.float32)

    # nn.Linear(n_embed, head_size): W ~ U(-1/sqrt(C), 1/sqrt(C)), shape (H, C);
    # stored transposed here as (C, H).
    bound = 1.0 / (C ** 0.5)

    def init_w(k):
        return jax.random.uniform(k, (C, head_size), jnp.float32, -bound, bound)

    def init_b(k):
        return jax.random.uniform(k, (head_size,), jnp.float32, -bound, bound)

    wk, bk = init_w(kwk), init_b(kbk)
    wq, bq = init_w(kwq), init_b(kbq)
    wv, bv = init_w(kwv), init_b(kbv)

    out = self_attention_head(x, wk, bk, wq, bq, wv, bv)
    out = jax.block_until_ready(out)
    ref = _reference(x, wk, bk, wq, bq, wv, bv)
    assert out.shape == (B, T, head_size)
    assert jnp.allclose(out, ref, atol=1e-4, rtol=1e-4)

    # Exercise the padding paths too: T not a sublane multiple, odd B.
    B2, T2 = 3, 5
    x2 = jax.random.normal(jax.random.PRNGKey(1), (B2, T2, C), dtype=jnp.float32)
    out2 = jax.block_until_ready(self_attention_head(x2, wk, bk, wq, bq, wv, bv))
    ref2 = _reference(x2, wk, bk, wq, bq, wv, bv)
    assert out2.shape == (B2, T2, head_size)
    assert jnp.allclose(out2, ref2, atol=1e-4, rtol=1e-4)

    print("KERNEL_OK")
</pallas_src>

<mosaic_0001>
module attributes {stable_mosaic.version = 11 : i64} {
  func.func @_attn_head_kernel(%arg0: i32, %arg1: memref<2x8x64xf32, #tpu.memory_space<vmem>>, %arg2: memref<64x384xf32, #tpu.memory_space<vmem>>, %arg3: memref<1x384xf32, #tpu.memory_space<vmem>>, %arg4: memref<2x8x128xf32, #tpu.memory_space<vmem>>) attributes {dimension_semantics = [#tpu.dimension_semantics<parallel>], iteration_bounds = array<i64: 1>, scalar_prefetch = 0 : i64, scratch_operands = 0 : i64, tpu.core_type = #tpu.core_type<tc>, window_params = [{transform_indices = @transform_0, window_bounds = array<i64: 2, 8, 64>}, {pipeline_mode = #tpu.pipeline_mode<synchronous>, transform_indices = @transform_1, window_bounds = array<i64: 64, 384>}, {pipeline_mode = #tpu.pipeline_mode<synchronous>, transform_indices = @transform_2, window_bounds = array<i64: 1, 384>}, {transform_indices = @transform_3, window_bounds = array<i64: 2, 8, 128>}]} {
    %c0 = arith.constant 0 : index
    %c0_0 = arith.constant 0 : index
    %c0_1 = arith.constant 0 : index
    %0 = vector.load %arg1[%c0, %c0_0, %c0_1] : memref<2x8x64xf32, #tpu.memory_space<vmem>>, vector<2x8x64xf32>
    %1 = vector.shape_cast %0 : vector<2x8x64xf32> to vector<16x64xf32>
    %c0_2 = arith.constant 0 : index
    %c0_3 = arith.constant 0 : index
    %2 = vector.load %arg2[%c0_2, %c0_3] : memref<64x384xf32, #tpu.memory_space<vmem>>, vector<64x384xf32>
    %cst = arith.constant dense<0.000000e+00> : vector<16x384xf32>
    %3 = tpu.matmul %1, %2, %cst {dimension_numbers = #tpu.dot_dimension_numbers<[1], [0], [0], [1], [0, 0, 1, 1], [], []>} : vector<16x64xf32>, vector<64x384xf32>, vector<16x384xf32> -> vector<16x384xf32>
    %c0_4 = arith.constant 0 : index
    %c0_5 = arith.constant 0 : index
    %4 = vector.load %arg3[%c0_4, %c0_5] : memref<1x384xf32, #tpu.memory_space<vmem>>, vector<1x384xf32>
    %5 = vector.broadcast %4 : vector<1x384xf32> to vector<16x384xf32>
    %6 = arith.addf %3, %5 : vector<16x384xf32>
    %7 = vector.shape_cast %6 : vector<16x384xf32> to vector<2x8x384xf32>
    %8 = vector.extract_strided_slice %7 {offsets = [0, 0, 0], sizes = [2, 8, 128], strides = [1, 1, 1]} : vector<2x8x384xf32> to vector<2x8x128xf32>
    %9 = vector.extract_strided_slice %7 {offsets = [0, 0, 128], sizes = [2, 8, 128], strides = [1, 1, 1]} : vector<2x8x384xf32> to vector<2x8x128xf32>
    %10 = vector.extract_strided_slice %7 {offsets = [0, 0, 256], sizes = [2, 8, 128], strides = [1, 1, 1]} : vector<2x8x384xf32> to vector<2x8x128xf32>
    "tpu.trace_start"() <{level = 10 : i32, message = "bth,bsh->bts"}> : () -> ()
    %cst_6 = arith.constant dense<0.000000e+00> : vector<2x8x8xf32>
    %11 = tpu.matmul %8, %9, %cst_6 {dimension_numbers = #tpu.dot_dimension_numbers<[2], [2], [1], [1], [0, 0, 0, 1, 1, 1], [0], [0]>} : vector<2x8x128xf32>, vector<2x8x128xf32>, vector<2x8x8xf32> -> vector<2x8x8xf32>
    "tpu.trace_stop"() : () -> ()
    %cst_7 = arith.constant 0.000000e+00 : f32
    %12 = vector.broadcast %cst_7 : f32 to vector<2x8x8xf32>
    %13 = arith.maximumf %11, %12 : vector<2x8x8xf32>
    %14 = math.absf %11 : vector<2x8x8xf32>
    %cst_8 = arith.constant 0.000000e+00 : f32
    %15 = vector.broadcast %cst_8 : f32 to vector<2x8x8xf32>
    %16 = arith.subf %15, %14 : vector<2x8x8xf32>
    %17 = math.exp %16 : vector<2x8x8xf32>
    %cst_9 = arith.constant 1.000000e+00 : f32
    %18 = vector.broadcast %cst_9 : f32 to vector<2x8x8xf32>
    %19 = arith.addf %18, %17 : vector<2x8x8xf32>
    %20 = math.log %19 : vector<2x8x8xf32>
    %21 = arith.addf %13, %20 : vector<2x8x8xf32>
    %22 = tpu.iota {dimensions = array<i32: 1>} : vector<2x8x8xi32>
    %23 = tpu.iota {dimensions = array<i32: 2>} : vector<2x8x8xi32>
    %24 = arith.cmpi sge, %22, %23 : vector<2x8x8xi32>
    %cst_10 = arith.constant 0.000000e+00 : f32
    %25 = vector.broadcast %cst_10 : f32 to vector<2x8x8xf32>
    %26 = arith.select %24, %21, %25 : vector<2x8x8xi1>, vector<2x8x8xf32>
    "tpu.trace_start"() <{level = 10 : i32, message = "bts,bsh->bth"}> : () -> ()
    %cst_11 = arith.constant dense<0.000000e+00> : vector<2x8x128xf32>
    %27 = tpu.matmul %26, %10, %cst_11 {dimension_numbers = #tpu.dot_dimension_numbers<[2], [1], [1], [2], [0, 0, 0, 1, 1, 2], [0], [0]>} : vector<2x8x8xf32>, vector<2x8x128xf32>, vector<2x8x128xf32> -> vector<2x8x128xf32>
    "tpu.trace_stop"() : () -> ()
    %c0_12 = arith.constant 0 : index
    %c0_13 = arith.constant 0 : index
    %c0_14 = arith.constant 0 : index
    %28 = vector.load %arg4[%c0_12, %c0_13, %c0_14] : memref<2x8x128xf32, #tpu.memory_space<vmem>>, vector<2x8x128xf32>
    tpu.vector_store %arg4[%c0_12, %c0_13, %c0_14], %27 {strides = array<i32>} : memref<2x8x128xf32, #tpu.memory_space<vmem>>, vector<2x8x128xf32>,
    return
  }
  func.func @transform_0(%arg0: i32) -> (i32, i32, i32) {
    %c0_i32 = arith.constant 0 : i32
    %c0_i32_0 = arith.constant 0 : i32
    %c0_i32_1 = arith.constant 0 : i32
    return %arg0, %c0_i32, %c0_i32_0 : i32, i32, i32
  }
  func.func @transform_1(%arg0: i32) -> (i32, i32) {
    %c0_i32 = arith.constant 0 : i32
    %c0_i32_0 = arith.constant 0 : i32
    %c0_i32_1 = arith.constant 0 : i32
    return %c0_i32, %c0_i32_0 : i32, i32
  }
  func.func @transform_2(%arg0: i32) -> (i32, i32) {
    %c0_i32 = arith.constant 0 : i32
    %c0_i32_0 = arith.constant 0 : i32
    %c0_i32_1 = arith.constant 0 : i32
    return %c0_i32, %c0_i32_0 : i32, i32
  }
  func.func @transform_3(%arg0: i32) -> (i32, i32, i32) {
    %c0_i32 = arith.constant 0 : i32
    %c0_i32_0 = arith.constant 0 : i32
    %c0_i32_1 = arith.constant 0 : i32
    return %arg0, %c0_i32, %c0_i32_0 : i32, i32, i32
  }
}

</mosaic_0001>

<bundles_post_ra>
// kernel: tpu_custom_call.1
= control target key start
LH: loop header
LB: loop body
LE: loop exit
PB: predicated region body
PF: predicated region fallthrough
CT: control target
= control target key end

     0   :  { %8 = vsyncpa [#allocation3], 0  ;;  %s853_s0 = inlined_call_operand.hbm [shape: f32[2,8,64], index: 0, kind: input, shape index: {}]   ;;  %s854_s1 = inlined_call_operand.hbm [shape: f32[64,384], index: 1, kind: input, shape index: {}]   ;;  %s855_s2 = inlined_call_operand.vmem [shape: f32[1,384], index: 2, kind: input, shape index: {}]   ;;  %s856_s3 = inlined_call_operand.hbm [shape: f32[2,8,128], index: 3, kind: output, shape index: {}]  }
   0x1   :  { %9 = vsyncpa [#allocation6], 0 }
   0x2   :  { %10 = vsyncpa [#allocation4], 0  ;;  %s761_s12 = smov [#allocation2]   ;;  %s689_s16 = scalar_lea.hbm %s853_s0, 256 }
   0x3   :  { %s16_s13 = sshll.u32 %s761_s12, 4  ;;  %p690_p0 = scmp.ne.s32.totalorder %s853_s0, %s689_s16  ;;  %s17_s13 = int_to_ptr.vmem [resolvable:$true] %s16_s13 }
   0x4   :  { %p693_p1 = scmp.lt.u32.totalorder %s689_s16, %s853_s0 }
   0x6   :  { %p695_p2 = pnand %p693_p1, %p690_p0 }
   0x8   :  { %698 = shalt.err (!%p695_p2)
}
   0x9   :  { %s699_s21 = scalar_lea.vmem %s17_s13, 256  ;;  %p704_p4 = scmp.lt.s32.totalorder %s17_s13, %s17_s13 }
   0xa   :  { %p700_p3 = scmp.ne.s32.totalorder %s17_s13, %s699_s21  ;;  %p705_p5 = scmp.lt.s32.totalorder %s699_s21, %s699_s21 }
   0xc   :  { %p706_p6 = por %p705_p5, %p704_p4 }
   0xe   :  { %p707_p7 = pnand %p706_p6, %p700_p3 }
  0x10   :  { %710 = shalt.err (!%p707_p7)
}
  0x11   :  { %s762_s22 = smov 128   ;;  %s763_s23 = smov 8  }
  0x12   :  { %22 = dma.hbm_to_vmem [thread:$0]  %s853_s0, 256, %s17_s13, [#allocation3], %s762_s22, %s762_s22, %s763_s23  }
  0x13   :  { %s764_s26 = smov [#allocation5]   ;;  %s711_s30 = scalar_lea.hbm %s854_s1, 3072 }
  0x14   :  { %s28_s27 = sshll.u32 %s764_s26, 4  ;;  %p712_p8 = scmp.ne.s32.totalorder %s854_s1, %s711_s30  ;;  %s29_s27 = int_to_ptr.vmem [resolvable:$true] %s28_s27 }
  0x15   :  { %p715_p9 = scmp.lt.u32.totalorder %s711_s30, %s854_s1 }
  0x17   :  { %p717_p10 = pnand %p715_p9, %p712_p8 }
  0x19   :  { %720 = shalt.err (!%p717_p10)
}
  0x1a   :  { %s721_s8 = scalar_lea.vmem %s29_s27, 3072  ;;  %p726_p12 = scmp.lt.s32.totalorder %s29_s27, %s29_s27 }
  0x1b   :  { %p722_p11 = scmp.ne.s32.totalorder %s29_s27, %s721_s8  ;;  %p727_p13 = scmp.lt.s32.totalorder %s721_s8, %s721_s8 }
  0x1d   :  { %p728_p0 = por %p727_p13, %p726_p12 }
  0x1f   :  { %p729_p1 = pnand %p728_p0, %p722_p11 }
  0x21   :  { %732 = shalt.err (!%p729_p1)
}
  0x22   :  { %s765_s0 = smov 384   ;;  %s766_s9 = smov 24  }
  0x23   :  { %34 = dma.hbm_to_vmem [thread:$0]  %s854_s1, 3072, %s29_s27, [#allocation6], %s765_s0, %s765_s0, %s766_s9  }
  0x24   :  { %755 = dma.done.wait [#allocation3], 256  }
  0x25   :  { %756 = vsyncadd [#allocation3], 4294967040 }
  0x26   :  { %757 = dma.done.wait [#allocation6], 3072  }
  0x27   :  { %758 = vsyncadd [#allocation6], 4294964224  ;;  %v767_v0 = vmov 0.0   ;;  %v46_v1 = vld [vmem:[#allocation5 + $0x8] sm:$0xff]  ;;  %v49_v2 = vld [vmem:[#allocation5 + $0x20] sm:$0xff]  ;;  %vm86_vm0 = vcmask 523264   ;;  %v71_v39 = vlaneseq }
  0x28   :  { %157 = vmatprep.mubr.f32.mxu0 %v767_v0  ;;  %v45_v3 = vld [vmem:[#allocation5] sm:$0xff]  ;;  %v640_v4 = vpack.c.bf16 %v49_v2, %v46_v1  ;;  %v48_v5 = vld [vmem:[#allocation5 + $0x18] sm:$0xff]  ;;  %v55_v7 = vld [vmem:[#allocation5 + $0x50] sm:$0xff]  ;;  %vm768_vm1 = vmmov 0   ;;  %vm410_vm3 = vcmask 64512  }
  0x29   :  { %v52_v6 = vld [vmem:[#allocation5 + $0x38] sm:$0xff]  ;;  %v642_v8 = vpack.c.bf16 %v48_v5, %v45_v3  ;;  %v51_v10 = vld [vmem:[#allocation5 + $0x30] sm:$0xff]  ;;  %v54_v11 = vld [vmem:[#allocation5 + $0x48] sm:$0xff]  ;;  %v72_v40 = vshrl.u32 %v71_v39, 7 }
  0x2a   :  { %v644_v9 = vpack.c.bf16 %v55_v7, %v52_v6  ;;  %v58_v12 = vld [vmem:[#allocation5 + $0x68] sm:$0xff]  ;;  %641 = vmatprep.subr.bf16.mxu0 %v640_v4  ;;  %v61_v13 = vld [vmem:[#allocation5 + $0x80] sm:$0xff]  ;;  %v646_v14 = vpack.c.bf16 %v54_v11, %v51_v10  ;;  %v60_v16 = vld [vmem:[#allocation5 + $0x78] sm:$0xff]  ;;  %v406_v11 = vand.u32 127, %v71_v39 }
  0x2b   :  { %643 = vmatpush1.bf16.msra.mxu0 %v642_v8  ;;  %v57_v15 = vld [vmem:[#allocation5 + $0x60] sm:$0xff]  ;;  %v648_v17 = vpack.c.bf16 %v61_v13, %v58_v12  ;;  %v64_v18 = vld [vmem:[#allocation5 + $0x98] sm:$0xff]  ;;  %v67_v19 = vld [vmem:[#allocation5 + $0xb0] sm:$0xff]  ;;  %v77_v41 = vsub.s32 1, %v72_v40  ;;  %v73_v43 = vsub.s32 0, %v72_v40  ;;  %v81_v46 = vsub.s32 2, %v72_v40 }
  0x2c   :  { %645 = vmatprep.subr.bf16.mxu0 %v644_v9  ;;  %v43_v20 = vld [vmem:[#allocation2] sm:$0xff]  ;;  %v50_v22 = vld [vmem:[#allocation5 + $0x28] sm:$0xff]  ;;  %v53_v23 = vld [vmem:[#allocation5 + $0x40] sm:$0xff]  ;;  %v650_v26 = vpack.c.bf16 %v60_v16, %v57_v15  ;;  %v652_v30 = vpack.c.bf16 %v67_v19, %v64_v18  ;;  %vm407_vm2 = vcmp.ge.s32.totalorder %v72_v40, %v406_v11 }
  0x2d   :  { %v47_v21 = vld [vmem:[#allocation5 + $0x10] sm:$0xff]  ;;  %617 = vmatprep.mubr.msk.f32.mxu1 %vm86_vm0, %v43_v20  ;;  %v56_v25 = vld [vmem:[#allocation5 + $0x58] sm:$0xff]  ;;  %v62_v29 = vld [vmem:[#allocation5 + $0x88] sm:$0xff] }
  0x2e   :  { %v656_v24 = vpack.c.bf16 %v50_v22, %v47_v21  ;;  %v660_v27 = vpack.c.bf16 %v56_v25, %v53_v23  ;;  %v59_v28 = vld [vmem:[#allocation5 + $0x70] sm:$0xff]  ;;  %v66_v32 = vld [vmem:[#allocation5 + $0xa8] sm:$0xff]  ;;  %v65_v35 = vld [vmem:[#allocation5 + $0xa0] sm:$0xff] }
  0x2f   :  { %647 = vmatpush1.bf16.msra.mxu0 %v646_v14  ;;  %v63_v31 = vld [vmem:[#allocation5 + $0x90] sm:$0xff]  ;;  %v664_v33 = vpack.c.bf16 %v62_v29, %v59_v28  ;;  %v68_v36 = vld [vmem:[#allocation5 + $0xb8] sm:$0xff] }
  0x30   :  { %649 = vmatprep.subr.bf16.mxu0 %v648_v17  ;;  %657 = vmatprep.subr.bf16.mxu1 %v656_v24  ;;  %v654_v34 = vpack.c.bf16 %v66_v32, %v63_v31  ;;  %v668_v37 = vpack.c.bf16 %v68_v36, %v65_v35  ;;  %v44_v38 = vld [vmem:[#allocation2 + $0x8] sm:$0xff]  ;;  %v69_v42 = vld [vmem:[%s855_s2] sm:$0x7]  ;;  %s769_s2 = smov [#allocation7]  }
  0x31   :  { %659 = vmatpush3.bf16.msra.mxu1 %v656_v24  ;;  %v78_v44 = vrot.slane %v69_v42, %v77_v41  ;;  %v74_v47 = vrot.slane %v69_v42, %v73_v43  ;;  %v82_v51 = vrot.slane %v69_v42, %v81_v46  ;;  %s564_s13 = sshll.u32 %s769_s2, 4  ;;  %s565_s13 = int_to_ptr.vmem [resolvable:$true] %s564_s13 }
  0x32   :  { %661 = vmatprep.subr.bf16.mxu1 %v660_v27  ;;  %s733_s14 = scalar_lea.vmem %s565_s13, 256  ;;  %p738_p3 = scmp.lt.s32.totalorder %s565_s13, %s565_s13 }
  0x33   :  { %651 = vmatpush1.bf16.msra.mxu0 %v650_v26  ;;  %p734_p2 = scmp.ne.s32.totalorder %s565_s13, %s733_s14  ;;  %p739_p4 = scmp.lt.s32.totalorder %s733_s14, %s733_s14 }
  0x34   :  { %653 = vmatprep.subr.bf16.mxu0 %v652_v30 }
  0x35   :  { %663 = vmatpush3.bf16.msra.mxu1 %v660_v27  ;;  %p740_p5 = por %p739_p4, %p738_p3 }
  0x36   :  { %665 = vmatprep.subr.bf16.mxu1 %v664_v33 }
  0x37   :  { %655 = vmatpush1.bf16.msra.mxu0 %v654_v34  ;;  %p741_p6 = pnand %p740_p5, %p734_p2 }
  0x38   :  { %625 = vmatprep.subr.mxu0 %v767_v0 }
  0x39   :  { %667 = vmatpush3.bf16.msra.mxu1 %v664_v33 }
  0x3a   :  { %577 = vmatmul.mubr.msk.f32.vlgmr.msra.gmra.mrb[0].mxu0 %vm86_vm0, %v43_v20  ;;  %669 = vmatprep.subr.bf16.mxu1 %v668_v37 }
  0x3b   :  { %163 = vmatprep.mubr.f32.mxu0 %v767_v0 }
  0x3d   :  { %671 = vmatpush3.bf16.msra.mxu1 %v668_v37 }
  0x3e   :  { %578 = vmatmul.mubr.msk.f32.gmra.mrb[2].mxu0 %vm86_vm0, %v44_v38  ;;  %620 = vmatprep.subr.mxu1 %v767_v0 }
  0x3f   :  { %627 = vmatprep.mubr.msk.f32.mxu0 %vm768_vm1, %v767_v0 }
  0x40   :  { %618 = vmatmul.mubr.msk.f32.vlgmr.msra.gmra.mrb[0].mxu1 %vm86_vm0, %v44_v38 }
  0x41   :  { %622 = vmatprep.mubr.msk.f32.mxu1 %vm768_vm1, %v767_v0 }
 0x10d   :  { %v159_v45 = vpop.f32.mrb[0].mxu0 }
 0x10e   :  { %v161_v48 = vpop.f32.mrb[1].mxu0  ;;  %v160_v52 = vadd.f32 %v159_v45, %v74_v47 }
 0x10f   :  { %v162_v49 = vadd.f32 %v161_v48, %v78_v44 }
 0x111   :  { %v165_v50 = vpop.f32.mrb[2].mxu0  ;;  %621 = vmatpush3.xpose.msra.mxu1 %v162_v49 }
 0x112   :  { %v167_v53 = vpop.f32.mrb[3].mxu0  ;;  %630 = vmatprep.subr.mxu1 %v767_v0  ;;  %v166_v59 = vadd.f32 %v165_v50, %v74_v47 }
 0x113   :  { %v168_v54 = vadd.f32 %v167_v53, %v78_v44  ;;  %v619_v55 = vpop.f32.mrb[0].mxu1 }
 0x114   :  { %623 = vmatmul.mubr.f32.vlgmr.msra.gmra.mrb[2].mxu1 %v160_v52  ;;  %v236_v56 = vpop.f32.mrb[1].mxu1  ;;  %v242_v57 = vadd.f32 %v619_v55, %v82_v51 }
 0x115   :  { %626 = vmatpush3.xpose.msra.mxu0 %v168_v54  ;;  %v237_v58 = vadd.f32 %v236_v56, %v82_v51  ;;  %632 = vmatprep.mubr.msk.f32.mxu1 %vm768_vm1, %v767_v0 }
 0x116   :  { %635 = vmatprep.subr.mxu0 %v767_v0 }
 0x117   :  { %631 = vmatpush3.msra.mxu1 %v237_v58 }
 0x118   :  { %628 = vmatmul.mubr.f32.vlgmr.msra.gmra.mrb[4].mxu0 %v166_v59 }
 0x119   :  { %636 = vmatpush3.msra.mxu0 %v242_v57  ;;  %637 = vmatprep.mubr.msk.f32.mxu0 %vm768_vm1, %v767_v0 }
 0x1e7   :  { %v311_v60 = vpop.f32.mrb[2].mxu1 }
 0x1e8   :  { %v387_v61 = vand.u32 2147483647, %v311_v60  ;;  %v624_v62 = vpop.f32.mrb[3].mxu1  ;;  %v385_v12 = vmax.f32 %v311_v60, 0.0 }
 0x1ea   :  { %v389_v63 = vsub.f32 0.0, %v387_v61 }
 0x1eb   :  { %v381_v1 = vpop.f32.mrb[4].mxu0 }
 0x1ec   :  { %v391_v2 = vmul.f32 1.442695, %v389_v63  ;;  %v388_v3 = vand.u32 2147483647, %v381_v1  ;;  %v629_v4 = vpop.f32.mrb[5].mxu0  ;;  %v386_v16 = vmax.f32 %v381_v1, 0.0 }
 0x1ee   :  { %681 = vpow2.f32 %v391_v2  ;;  %v390_v5 = vsub.f32 0.0, %v388_v3 }
 0x1f0   :  { %v393_v6 = vmul.f32 1.442695, %v390_v5 }
 0x1f2   :  { %683 = vpow2.f32 %v393_v6 }
 0x1f8   :  { %v682_v7 = vpop.eup %681 }
 0x1f9   :  { %v395_v8 = vadd.f32 1.0, %v682_v7 }
 0x1fb   :  { %685 = vlog2.f32 %v395_v8 }
 0x1fc   :  { %v684_v9 = vpop.eup %683 }
 0x1fd   :  { %v396_v10 = vadd.f32 1.0, %v684_v9 }
 0x1ff   :  { %687 = vlog2.f32 %v396_v10 }
 0x205   :  { %v686_v0 = vpop.eup %685 }
 0x206   :  { %v398_v13 = vmul.f32 0.6931472, %v686_v0 }
 0x208   :  { %v401_v14 = vadd.f32 %v398_v13, %v385_v12 }
 0x209   :  { %v688_v15 = vpop.eup %687 }
 0x20a   :  { %v400_v17 = vmul.f32 0.6931472, %v688_v15  ;;  %v408_v18 = vsel %vm407_vm2, %v401_v14, 0.0 }
 0x20b   :  { %633 = vmatmul.mubr.msk.f32.vlgmr.msra.gmra.mrb[4].mxu1 %vm410_vm3, %v408_v18 }
 0x20c   :  { %v402_v19 = vadd.f32 %v400_v17, %v386_v16 }
 0x20e   :  { %v409_v20 = vsel %vm407_vm2, %v402_v19, 0.0 }
 0x20f   :  { %638 = vmatmul.mubr.msk.f32.vlgmr.msra.gmra.mrb[6].mxu0 %vm410_vm3, %v409_v20 }
 0x2de   :  { %v480_v21 = vpop.f32.mrb[4].mxu1 }
 0x2df   :  { %557 = vst [vmem:[#allocation7] sm:$0xff] %v480_v21  ;;  %v634_v22 = vpop.f32.mrb[5].mxu1 }
 0x2e2   :  { %v553_v23 = vpop.f32.mrb[6].mxu0 }
 0x2e3   :  { %558 = vst [vmem:[#allocation7 + $0x8] sm:$0xff] %v553_v23  ;;  %v639_v24 = vpop.f32.mrb[7].mxu0 }
 0x2e4   :  { %744 = shalt.err (!%p741_p6)
}
 0x2e5   :  { %s745_s17 = scalar_lea.hbm %s856_s3, 256 }
 0x2e6   :  { %p746_p7 = scmp.ne.s32.totalorder %s856_s3, %s745_s17  ;;  %p749_p8 = scmp.lt.u32.totalorder %s745_s17, %s856_s3 }
 0x2e8   :  { %p751_p9 = pnand %p749_p8, %p746_p7 }
 0x2ea   :  { %754 = shalt.err (!%p751_p9)
}
 0x2eb   :  { %570 = dma.vmem_to_hbm [thread:$0]  %s565_s13, 256, %s856_s3, [#allocation4], %s762_s22, %s762_s22, %s763_s23  }
 0x2ec   :  { %759 = dma.done.wait [#allocation4], 256  }
 0x2ed   :  { %760 = vsyncadd [#allocation4], 4294967040 }
 0x2ee   :  { %574 = vsyncpa [#allocation3], 1 }
 0x2ef   :  { %575 = vsyncpa [#allocation6], 1 }
 0x2f0   :  { %576 = vsyncpa [#allocation4], 1 }

</bundles_post_ra>
